<compile_context>
chip_gen: v7x
topology: tpu7x:2x2x1
jax: 0.10.0
libtpu: 0.0.40
codegen_flags: <defaults>
</compile_context>

<pallas_src>
import jax
import jax.numpy as jnp
from jax.experimental import pallas as pl
from jax.experimental.pallas import tpu as pltpu


# ----------------------------- Pallas kernel --------------------------------

def _fmencoder_kernel(a_ref, xp_ref, w1_ref, b1_ref, w2_ref, b2_ref,
                      m_ref, wh_ref,
                      xd_ref, e_ref, dninv_ref,
                      wf1d_ref, wf1p_ref, bf1_ref, wf2_ref, bf2_ref,
                      o_ref):
    f32 = jnp.float32

    # --- PPEncoder: GCNConv -> ReLU -> GCNConv (a_pp resident in VMEM once) --
    a = a_ref[...]
    h1 = jnp.dot(a,
                 jnp.dot(xp_ref[...], w1_ref[...], preferred_element_type=f32),
                 preferred_element_type=f32) + b1_ref[...]
    h1 = jnp.maximum(h1, 0.0)
    h2 = jnp.dot(a,
                 jnp.dot(h1, w2_ref[...], preferred_element_type=f32),
                 preferred_element_type=f32) + b2_ref[...]

    # --- MyHierarchyConv: mean-aggregate (prot columns only) then project ---
    # (the drug rows of the original torch.cat((x_prot, hdrug)) are zeros, so
    #  their columns of the aggregation operator were dropped in the wrapper)
    xp_d = jnp.dot(jnp.dot(m_ref[...], h2, preferred_element_type=f32),
                   wh_ref[...], preferred_element_type=f32)

    # --- drug embedding: (x_drug @ embed) * (1 / d_norm) ---------------------
    xd = jnp.dot(xd_ref[...], e_ref[...], preferred_element_type=f32)
    xd = xd * dninv_ref[...]

    # --- merge + FFN + sigmoid ----------------------------------------------
    # x_merge = concat([xd, xp_d], axis=1); ReLU distributes over the concat,
    # so Linear(concat) is computed as a split matmul (no in-kernel concat).
    h = (jnp.dot(jnp.maximum(xd, 0.0), wf1d_ref[...], preferred_element_type=f32)
         + jnp.dot(jnp.maximum(xp_d, 0.0), wf1p_ref[...], preferred_element_type=f32)
         + bf1_ref[...])
    h = jnp.maximum(h, 0.0)
    h = jnp.dot(h, wf2_ref[...], preferred_element_type=f32) + bf2_ref[...]
    o_ref[...] = jax.nn.sigmoid(h)          # lane-dense (padded) store


def _fused_call(out_rows, out_cols_pad, *args):
    in_specs = [pl.BlockSpec(memory_space=pltpu.MemorySpace.VMEM) for _ in args]
    return pl.pallas_call(
        _fmencoder_kernel,
        out_shape=jax.ShapeDtypeStruct((out_rows, out_cols_pad), jnp.float32),
        in_specs=in_specs,
        out_specs=pl.BlockSpec(memory_space=pltpu.MemorySpace.VMEM),
        compiler_params=pltpu.CompilerParams(vmem_limit_bytes=64 * 1024 * 1024),
    )(*args)


# --------------------------- plain-JAX glue ---------------------------------

def gcn_dense_adj(edge_index, num_nodes):
    """Dense D^{-1/2}(A+I)D^{-1/2} matching torch_geometric gcn_norm."""
    # TODO(synk): at large n_prot, precompute host-side or use a sparse/CSR
    #             scalar-prefetch formulation instead of O(n^2) dense A.
    row, col = edge_index[0], edge_index[1]
    sl = jnp.arange(num_nodes, dtype=row.dtype)
    row = jnp.concatenate([row, sl])
    col = jnp.concatenate([col, sl])
    # A[i, j] = multiplicity of edges j -> i (aggregation writes to targets).
    adj = jnp.zeros((num_nodes, num_nodes), jnp.float32).at[col, row].add(1.0)
    deg = adj.sum(axis=1)
    dinv = jnp.where(deg > 0, 1.0 / jnp.sqrt(deg), 0.0)
    return adj * dinv[:, None] * dinv[None, :]


def mean_agg_matrix(edge_index, num_nodes_total, start_row):
    """Dense mean-aggregation operator of MessagePassing(aggr='mean'),
    returning only the target (drug) rows [start_row:] (all columns)."""
    row, col = edge_index[0], edge_index[1]
    adj = jnp.zeros((num_nodes_total, num_nodes_total),
                    jnp.float32).at[col, row].add(1.0)
    deg = adj.sum(axis=1)
    m = adj / jnp.maximum(deg, 1.0)[:, None]
    return m[start_row:, :]


# --------------------------- model definition -------------------------------

class FMEncoderCatPallas:
    def __init__(self, key, in_dim_drug, in_dim_prot, uni_num_prot, uni_num_drug,
                 prot_drug_dim=16, n_embed=48, n_hid1=32, n_hid2=16):
        self.uni_num_prot = uni_num_prot
        self.uni_num_drug = uni_num_drug
        self.pp_out_dim = n_hid2
        self.n_embed = n_embed
        ffn_hidden = n_hid2 + n_embed
        ks = jax.random.split(key, 8)
        f32 = jnp.float32
        self.params = {
            # PPEncoder (two GCNConv layers, bias=True by default)
            "w_conv1": (jax.random.normal(ks[0], (in_dim_prot, n_hid1), f32)
                        / jnp.sqrt(jnp.float32(in_dim_prot))),
            "b_conv1": jnp.zeros((1, n_hid1), f32),
            "w_conv2": (jax.random.normal(ks[1], (n_hid1, n_hid2), f32)
                        / jnp.sqrt(jnp.float32(n_hid1))),
            "b_conv2": jnp.zeros((1, n_hid2), f32),
            # self.embed : normal_()
            "embed": jax.random.normal(ks[2], (in_dim_drug, n_embed), f32),
            # MyHierarchyConv weight: normal(std = 1/sqrt(in_dim)), no bias
            "w_hgcn": (jax.random.normal(ks[3], (n_hid2, prot_drug_dim), f32)
                       / jnp.sqrt(jnp.float32(n_hid2))),
            # FFN: Linear(64, 64), Linear(64, uni_num_drug)  (stored as (in, out))
            "w_ffn1": (jax.random.normal(ks[4], (ffn_hidden, ffn_hidden), f32)
                       / jnp.sqrt(jnp.float32(ffn_hidden))),
            "b_ffn1": 0.01 * jax.random.normal(ks[5], (1, ffn_hidden), f32),
            "w_ffn2": (jax.random.normal(ks[6], (ffn_hidden, uni_num_drug), f32)
                       / jnp.sqrt(jnp.float32(ffn_hidden))),
            "b_ffn2": 0.01 * jax.random.normal(ks[7], (1, uni_num_drug), f32),
            # self.d_norm = ones(in_dim_drug); used as (num_drug_rows, 1) — the
            # original module implicitly requires in_dim_drug == num drug rows.
            "d_norm": jnp.ones((in_dim_drug, 1), f32),
        }

    def forward(self, x_prot, pp_edge_index, dp_edge_index, x_drug):
        p = self.params
        n_prot = self.uni_num_prot
        n_drug = self.uni_num_drug
        n_embed = self.n_embed

        # dense graph operators (small demo scale; see TODO in gcn_dense_adj)
        a_pp = gcn_dense_adj(pp_edge_index, n_prot)
        m_full = mean_agg_matrix(dp_edge_index, n_prot + n_drug, n_prot)
        m_prot = m_full[:, :n_prot]           # drug columns multiply zeros -> drop

        # split FFN layer-1 weight along its input (concat) axis
        wf1_d = p["w_ffn1"][:n_embed, :]
        wf1_p = p["w_ffn1"][n_embed:, :]

        # lane-dense output: pad uni_num_drug -> multiple of 128, slice after
        out_pad = pl.cdiv(n_drug, 128) * 128
        wf2_pad = jnp.zeros((p["w_ffn2"].shape[0], out_pad),
                            jnp.float32).at[:, :n_drug].set(p["w_ffn2"])
        bf2_pad = jnp.zeros((1, out_pad), jnp.float32).at[:, :n_drug].set(p["b_ffn2"])

        # reciprocal precomputed once: multiply in-kernel instead of divide
        dn_inv = 1.0 / p["d_norm"]

        out_rows = x_drug.shape[0]
        out = _fused_call(
            out_rows, out_pad,
            a_pp, x_prot, p["w_conv1"], p["b_conv1"], p["w_conv2"], p["b_conv2"],
            m_prot, p["w_hgcn"],
            x_drug, p["embed"], dn_inv,
            wf1_d, wf1_p, p["b_ffn1"], wf2_pad, bf2_pad)

        return out[:, :n_drug].reshape(-1)

    # pure-JAX reference (un-optimized semantics) for correctness checking
    def reference(self, x_prot, pp_edge_index, dp_edge_index, x_drug):
        p = self.params
        n_prot, n_drug = self.uni_num_prot, self.uni_num_drug
        a_pp = gcn_dense_adj(pp_edge_index, n_prot)
        h = jnp.maximum(a_pp @ (x_prot @ p["w_conv1"]) + p["b_conv1"], 0.0)
        h = a_pp @ (h @ p["w_conv2"]) + p["b_conv2"]
        x_cat = jnp.concatenate(
            [h, jnp.zeros((n_drug, self.pp_out_dim), jnp.float32)], axis=0)
        m_agg = mean_agg_matrix(dp_edge_index, n_prot + n_drug, n_prot)
        xp = (m_agg @ x_cat) @ p["w_hgcn"]
        xd = (x_drug @ p["embed"]) / p["d_norm"]
        xm = jnp.concatenate([xd, xp], axis=1)
        h = jnp.maximum(xm, 0.0) @ p["w_ffn1"] + p["b_ffn1"]
        h = jnp.maximum(h, 0.0) @ p["w_ffn2"] + p["b_ffn2"]
        return jax.nn.sigmoid(h).reshape(-1)


# ------------------------------- main ----------------------------------------

if __name__ == "__main__":
    # Small, self-consistent shapes:
    in_dim_prot = 8
    uni_num_prot = 16
    uni_num_drug = 8
    in_dim_drug = 8          # must equal #drug rows for the d_norm broadcast
    n_embed, n_hid1, n_hid2, prot_drug_dim = 48, 32, 16, 16

    key = jax.random.PRNGKey(0)
    k_model, k_xp, k_xd, k_e1, k_e2, k_e3 = jax.random.split(key, 6)

    model = FMEncoderCatPallas(k_model, in_dim_drug, in_dim_prot,
                               uni_num_prot, uni_num_drug,
                               prot_drug_dim=prot_drug_dim, n_embed=n_embed,
                               n_hid1=n_hid1, n_hid2=n_hid2)

    x_prot = jax.random.normal(k_xp, (uni_num_prot, in_dim_prot), jnp.float32)
    x_drug = jax.random.normal(k_xd, (uni_num_drug, in_dim_drug), jnp.float32)

    # protein-protein edges (symmetrized)
    src = jax.random.randint(k_e1, (24,), 0, uni_num_prot, dtype=jnp.int32)
    dst = jax.random.randint(k_e2, (24,), 0, uni_num_prot, dtype=jnp.int32)
    pp_edge_index = jnp.stack([jnp.concatenate([src, dst]),
                               jnp.concatenate([dst, src])])

    # drug-protein edges: sources are prot nodes [0, uni_num_prot),
    # targets are drug nodes [uni_num_prot, uni_num_prot + uni_num_drug)
    dp_src = jax.random.randint(k_e3, (2 * uni_num_drug,), 0, uni_num_prot,
                                dtype=jnp.int32)
    dp_dst = uni_num_prot + jnp.repeat(jnp.arange(uni_num_drug, dtype=jnp.int32), 2)
    dp_edge_index = jnp.stack([dp_src, dp_dst])
    # dp_range_list is not needed: MyHierarchyConv.update ignores it.

    out = model.forward(x_prot, pp_edge_index, dp_edge_index, x_drug)
    out = jax.block_until_ready(out)

    ref = model.reference(x_prot, pp_edge_index, dp_edge_index, x_drug)
    assert out.shape == (uni_num_drug * uni_num_drug,)
    assert jnp.allclose(out, ref, rtol=2e-2, atol=2e-2), "mismatch vs reference"

    print("KERNEL_OK")
</pallas_src>

<mosaic_0001>
module attributes {stable_mosaic.version = 11 : i64} {
  func.func @_fmencoder_kernel(%arg0: memref<16x16xf32, #tpu.memory_space<vmem>>, %arg1: memref<16x8xf32, #tpu.memory_space<vmem>>, %arg2: memref<8x32xf32, #tpu.memory_space<vmem>>, %arg3: memref<1x32xf32, #tpu.memory_space<vmem>>, %arg4: memref<32x16xf32, #tpu.memory_space<vmem>>, %arg5: memref<1x16xf32, #tpu.memory_space<vmem>>, %arg6: memref<8x16xf32, #tpu.memory_space<vmem>>, %arg7: memref<16x16xf32, #tpu.memory_space<vmem>>, %arg8: memref<8x8xf32, #tpu.memory_space<vmem>>, %arg9: memref<8x48xf32, #tpu.memory_space<vmem>>, %arg10: memref<8x1xf32, #tpu.memory_space<vmem>>, %arg11: memref<48x64xf32, #tpu.memory_space<vmem>>, %arg12: memref<16x64xf32, #tpu.memory_space<vmem>>, %arg13: memref<1x64xf32, #tpu.memory_space<vmem>>, %arg14: memref<64x128xf32, #tpu.memory_space<vmem>>, %arg15: memref<1x128xf32, #tpu.memory_space<vmem>>, %arg16: memref<8x128xf32, #tpu.memory_space<vmem>>) attributes {dimension_semantics = [], scalar_prefetch = 0 : i64, scratch_operands = 0 : i64, tpu.core_type = #tpu.core_type<tc>} {
    %c0 = arith.constant 0 : index
    %c0_0 = arith.constant 0 : index
    %0 = vector.load %arg0[%c0, %c0_0] : memref<16x16xf32, #tpu.memory_space<vmem>>, vector<16x16xf32>
    %c0_1 = arith.constant 0 : index
    %c0_2 = arith.constant 0 : index
    %1 = vector.load %arg1[%c0_1, %c0_2] : memref<16x8xf32, #tpu.memory_space<vmem>>, vector<16x8xf32>
    %c0_3 = arith.constant 0 : index
    %c0_4 = arith.constant 0 : index
    %2 = vector.load %arg2[%c0_3, %c0_4] : memref<8x32xf32, #tpu.memory_space<vmem>>, vector<8x32xf32>
    %cst = arith.constant dense<0.000000e+00> : vector<16x32xf32>
    %3 = tpu.matmul %1, %2, %cst {dimension_numbers = #tpu.dot_dimension_numbers<[1], [0], [0], [1], [0, 0, 1, 1], [], []>} : vector<16x8xf32>, vector<8x32xf32>, vector<16x32xf32> -> vector<16x32xf32>
    %cst_5 = arith.constant dense<0.000000e+00> : vector<16x32xf32>
    %4 = tpu.matmul %0, %3, %cst_5 {dimension_numbers = #tpu.dot_dimension_numbers<[1], [0], [0], [1], [0, 0, 1, 1], [], []>} : vector<16x16xf32>, vector<16x32xf32>, vector<16x32xf32> -> vector<16x32xf32>
    %c0_6 = arith.constant 0 : index
    %c0_7 = arith.constant 0 : index
    %5 = vector.load %arg3[%c0_6, %c0_7] : memref<1x32xf32, #tpu.memory_space<vmem>>, vector<1x32xf32>
    %6 = vector.broadcast %5 : vector<1x32xf32> to vector<16x32xf32>
    %7 = arith.addf %4, %6 : vector<16x32xf32>
    %cst_8 = arith.constant 0.000000e+00 : f32
    %8 = vector.broadcast %cst_8 : f32 to vector<16x32xf32>
    %9 = arith.maximumf %7, %8 : vector<16x32xf32>
    %c0_9 = arith.constant 0 : index
    %c0_10 = arith.constant 0 : index
    %10 = vector.load %arg4[%c0_9, %c0_10] : memref<32x16xf32, #tpu.memory_space<vmem>>, vector<32x16xf32>
    %cst_11 = arith.constant dense<0.000000e+00> : vector<16x16xf32>
    %11 = tpu.matmul %9, %10, %cst_11 {dimension_numbers = #tpu.dot_dimension_numbers<[1], [0], [0], [1], [0, 0, 1, 1], [], []>} : vector<16x32xf32>, vector<32x16xf32>, vector<16x16xf32> -> vector<16x16xf32>
    %cst_12 = arith.constant dense<0.000000e+00> : vector<16x16xf32>
    %12 = tpu.matmul %0, %11, %cst_12 {dimension_numbers = #tpu.dot_dimension_numbers<[1], [0], [0], [1], [0, 0, 1, 1], [], []>} : vector<16x16xf32>, vector<16x16xf32>, vector<16x16xf32> -> vector<16x16xf32>
    %c0_13 = arith.constant 0 : index
    %c0_14 = arith.constant 0 : index
    %13 = vector.load %arg5[%c0_13, %c0_14] : memref<1x16xf32, #tpu.memory_space<vmem>>, vector<1x16xf32>
    %14 = vector.broadcast %13 : vector<1x16xf32> to vector<16x16xf32>
    %15 = arith.addf %12, %14 : vector<16x16xf32>
    %c0_15 = arith.constant 0 : index
    %c0_16 = arith.constant 0 : index
    %16 = vector.load %arg6[%c0_15, %c0_16] : memref<8x16xf32, #tpu.memory_space<vmem>>, vector<8x16xf32>
    %cst_17 = arith.constant dense<0.000000e+00> : vector<8x16xf32>
    %17 = tpu.matmul %16, %15, %cst_17 {dimension_numbers = #tpu.dot_dimension_numbers<[1], [0], [0], [1], [0, 0, 1, 1], [], []>} : vector<8x16xf32>, vector<16x16xf32>, vector<8x16xf32> -> vector<8x16xf32>
    %c0_18 = arith.constant 0 : index
    %c0_19 = arith.constant 0 : index
    %18 = vector.load %arg7[%c0_18, %c0_19] : memref<16x16xf32, #tpu.memory_space<vmem>>, vector<16x16xf32>
    %cst_20 = arith.constant dense<0.000000e+00> : vector<8x16xf32>
    %19 = tpu.matmul %17, %18, %cst_20 {dimension_numbers = #tpu.dot_dimension_numbers<[1], [0], [0], [1], [0, 0, 1, 1], [], []>} : vector<8x16xf32>, vector<16x16xf32>, vector<8x16xf32> -> vector<8x16xf32>
    %c0_21 = arith.constant 0 : index
    %c0_22 = arith.constant 0 : index
    %20 = vector.load %arg8[%c0_21, %c0_22] : memref<8x8xf32, #tpu.memory_space<vmem>>, vector<8x8xf32>
    %c0_23 = arith.constant 0 : index
    %c0_24 = arith.constant 0 : index
    %21 = vector.load %arg9[%c0_23, %c0_24] : memref<8x48xf32, #tpu.memory_space<vmem>>, vector<8x48xf32>
    %cst_25 = arith.constant dense<0.000000e+00> : vector<8x48xf32>
    %22 = tpu.matmul %20, %21, %cst_25 {dimension_numbers = #tpu.dot_dimension_numbers<[1], [0], [0], [1], [0, 0, 1, 1], [], []>} : vector<8x8xf32>, vector<8x48xf32>, vector<8x48xf32> -> vector<8x48xf32>
    %c0_26 = arith.constant 0 : index
    %c0_27 = arith.constant 0 : index
    %23 = vector.load %arg10[%c0_26, %c0_27] : memref<8x1xf32, #tpu.memory_space<vmem>>, vector<8x1xf32>
    %24 = vector.broadcast %23 : vector<8x1xf32> to vector<8x48xf32>
    %25 = arith.mulf %22, %24 : vector<8x48xf32>
    %cst_28 = arith.constant 0.000000e+00 : f32
    %26 = vector.broadcast %cst_28 : f32 to vector<8x48xf32>
    %27 = arith.maximumf %25, %26 : vector<8x48xf32>
    %c0_29 = arith.constant 0 : index
    %c0_30 = arith.constant 0 : index
    %28 = vector.load %arg11[%c0_29, %c0_30] : memref<48x64xf32, #tpu.memory_space<vmem>>, vector<48x64xf32>
    %cst_31 = arith.constant dense<0.000000e+00> : vector<8x64xf32>
    %29 = tpu.matmul %27, %28, %cst_31 {dimension_numbers = #tpu.dot_dimension_numbers<[1], [0], [0], [1], [0, 0, 1, 1], [], []>} : vector<8x48xf32>, vector<48x64xf32>, vector<8x64xf32> -> vector<8x64xf32>
    %cst_32 = arith.constant 0.000000e+00 : f32
    %30 = vector.broadcast %cst_32 : f32 to vector<8x16xf32>
    %31 = arith.maximumf %19, %30 : vector<8x16xf32>
    %c0_33 = arith.constant 0 : index
    %c0_34 = arith.constant 0 : index
    %32 = vector.load %arg12[%c0_33, %c0_34] : memref<16x64xf32, #tpu.memory_space<vmem>>, vector<16x64xf32>
    %cst_35 = arith.constant dense<0.000000e+00> : vector<8x64xf32>
    %33 = tpu.matmul %31, %32, %cst_35 {dimension_numbers = #tpu.dot_dimension_numbers<[1], [0], [0], [1], [0, 0, 1, 1], [], []>} : vector<8x16xf32>, vector<16x64xf32>, vector<8x64xf32> -> vector<8x64xf32>
    %34 = arith.addf %29, %33 : vector<8x64xf32>
    %c0_36 = arith.constant 0 : index
    %c0_37 = arith.constant 0 : index
    %35 = vector.load %arg13[%c0_36, %c0_37] : memref<1x64xf32, #tpu.memory_space<vmem>>, vector<1x64xf32>
    %36 = vector.broadcast %35 : vector<1x64xf32> to vector<8x64xf32>
    %37 = arith.addf %34, %36 : vector<8x64xf32>
    %cst_38 = arith.constant 0.000000e+00 : f32
    %38 = vector.broadcast %cst_38 : f32 to vector<8x64xf32>
    %39 = arith.maximumf %37, %38 : vector<8x64xf32>
    %c0_39 = arith.constant 0 : index
    %c0_40 = arith.constant 0 : index
    %40 = vector.load %arg14[%c0_39, %c0_40] : memref<64x128xf32, #tpu.memory_space<vmem>>, vector<64x128xf32>
    %cst_41 = arith.constant dense<0.000000e+00> : vector<8x128xf32>
    %41 = tpu.matmul %39, %40, %cst_41 {dimension_numbers = #tpu.dot_dimension_numbers<[1], [0], [0], [1], [0, 0, 1, 1], [], []>} : vector<8x64xf32>, vector<64x128xf32>, vector<8x128xf32> -> vector<8x128xf32>
    %c0_42 = arith.constant 0 : index
    %c0_43 = arith.constant 0 : index
    %42 = vector.load %arg15[%c0_42, %c0_43] : memref<1x128xf32, #tpu.memory_space<vmem>>, vector<1x128xf32>
    %43 = vector.broadcast %42 : vector<1x128xf32> to vector<8x128xf32>
    %44 = arith.addf %41, %43 : vector<8x128xf32>
    %45 = arith.negf %44 : vector<8x128xf32>
    %46 = math.exp %45 : vector<8x128xf32>
    %cst_44 = arith.constant 1.000000e+00 : f32
    %47 = vector.broadcast %cst_44 : f32 to vector<8x128xf32>
    %48 = arith.addf %47, %46 : vector<8x128xf32>
    %49 = arith.divf %47, %48 : vector<8x128xf32>
    %c0_45 = arith.constant 0 : index
    %c0_46 = arith.constant 0 : index
    %50 = vector.load %arg16[%c0_45, %c0_46] : memref<8x128xf32, #tpu.memory_space<vmem>>, vector<8x128xf32>
    tpu.vector_store %arg16[%c0_45, %c0_46], %49 {strides = array<i32>} : memref<8x128xf32, #tpu.memory_space<vmem>>, vector<8x128xf32>,
    return
  }
}

</mosaic_0001>

<bundles_post_ra>
// kernel: tpu_custom_call.1
= control target key start
LH: loop header
LB: loop body
LE: loop exit
PB: predicated region body
PF: predicated region fallthrough
CT: control target
= control target key end

     0   :  { %s2145_s0 = inlined_call_operand.hbm [shape: f32[16,16], index: 0, kind: input, shape index: {}]   ;;  %s2146_s1 = inlined_call_operand.hbm [shape: f32[16,8], index: 1, kind: input, shape index: {}]   ;;  %s2147_s2 = inlined_call_operand.hbm [shape: f32[8,32], index: 2, kind: input, shape index: {}]   ;;  %s2148_s3 = inlined_call_operand.hbm [shape: f32[1,32], index: 3, kind: input, shape index: {}]   ;;  %s2149_s4 = inlined_call_operand.hbm [shape: f32[32,16], index: 4, kind: input, shape index: {}]   ;;  %s2150_s5 = inlined_call_operand.hbm [shape: f32[1,16], index: 5, kind: input, shape index: {}]   ;;  %s2151_s6 = inlined_call_operand.hbm [shape: f32[8,16], index: 6, kind: input, shape index: {}]   ;;  %s2152_s7 = inlined_call_operand.hbm [shape: f32[16,16], index: 7, kind: input, shape index: {}]   ;;  %s2153_s8 = inlined_call_operand.hbm [shape: f32[8,8], index: 8, kind: input, shape index: {}]   ;;  %s2154_s9 = inlined_call_operand.hbm [shape: f32[8,48], index: 9, kind: input, shape index: {}]   ;;  %s2155_s10 = inlined_call_operand.hbm [shape: f32[8,1], index: 10, kind: input, shape index: {}]   ;;  %s2156_s11 = inlined_call_operand.hbm [shape: f32[48,64], index: 11, kind: input, shape index: {}]   ;;  %s2157_s12 = inlined_call_operand.hbm [shape: f32[16,64], index: 12, kind: input, shape index: {}]   ;;  %s2158_s13 = inlined_call_operand.hbm [shape: f32[1,64], index: 13, kind: input, shape index: {}]   ;;  %s2159_s14 = inlined_call_operand.hbm [shape: f32[64,128], index: 14, kind: input, shape index: {}]   ;;  %s2160_s15 = inlined_call_operand.hbm [shape: f32[1,128], index: 15, kind: input, shape index: {}]   ;;  %s2161_s16 = inlined_call_operand.hbm [shape: f32[8,128], index: 16, kind: output, shape index: {}]  }
   0x1   :  { %2163 = sst [smem:[#allocation39_spill]] %s2145_s0 }
   0x2   :  { %21 = vsyncpa [#allocation3], 0 }
   0x3   :  { %22 = vsyncpa [#allocation6], 0 }
   0x4   :  { %23 = vsyncpa [#allocation9], 0 }
   0x5   :  { %24 = vsyncpa [#allocation12], 0 }
   0x6   :  { %25 = vsyncpa [#allocation15], 0 }
   0x7   :  { %26 = vsyncpa [#allocation18], 0 }
   0x8   :  { %27 = vsyncpa [#allocation21], 0 }
   0x9   :  { %28 = vsyncpa [#allocation24], 0 }
   0xa   :  { %29 = vsyncpa [#allocation27], 0 }
   0xb   :  { %30 = vsyncpa [#allocation4], 0  ;;  %s1736_s21 = smov [#allocation5]   ;;  %s1737_s23 = smov [#allocation8]  }
   0xc   :  { %s48_s22 = sshll.u32 %s1736_s21, 4  ;;  %s71_s24 = sshll.u32 %s1737_s23, 4  ;;  %s49_s22 = int_to_ptr.vmem [resolvable:$true] %s48_s22  ;;  %s1844_s24 = int_to_ptr.vmem [resolvable:$true] %s71_s24 }
   0xd   :  { %s1342_s27 = scalar_lea.hbm %s2146_s1, 256 }
   0xe   :  { %p1343_p0 = scmp.ne.s32.totalorder %s2146_s1, %s1342_s27  ;;  %p1346_p1 = scmp.lt.u32.totalorder %s1342_s27, %s2146_s1 }
  0x10   :  { %p1348_p2 = pnand %p1346_p1, %p1343_p0 }
  0x12   :  { %1351 = shalt.err (!%p1348_p2)
}
  0x13   :  { %s1352_s17 = scalar_lea.vmem %s49_s22, 256  ;;  %p1357_p4 = scmp.lt.s32.totalorder %s49_s22, %s49_s22 }
  0x14   :  { %p1353_p3 = scmp.ne.s32.totalorder %s49_s22, %s1352_s17  ;;  %p1358_p5 = scmp.lt.s32.totalorder %s1352_s17, %s1352_s17 }
  0x16   :  { %p1359_p6 = por %p1358_p5, %p1357_p4 }
  0x18   :  { %p1360_p7 = pnand %p1359_p6, %p1353_p3 }
  0x1a   :  { %1363 = shalt.err (!%p1360_p7)
}
  0x1b   :  { %s1738_s18 = smov 128   ;;  %s1739_s19 = smov 8  }
  0x1c   :  { %54 = dma.hbm_to_vmem [thread:$0]  %s2146_s1, 256, %s49_s22, [#allocation6], %s1738_s18, %s1738_s18, %s1739_s19  }
  0x1d   :  { %s1364_s26 = scalar_lea.hbm %s2148_s3, 16 }
  0x1e   :  { %p1365_p8 = scmp.ne.s32.totalorder %s2148_s3, %s1364_s26  ;;  %p1368_p9 = scmp.lt.u32.totalorder %s1364_s26, %s2148_s3 }
  0x20   :  { %p1370_p10 = pnand %p1368_p9, %p1365_p8 }
  0x22   :  { %1373 = shalt.err (!%p1370_p10)
}
  0x23   :  { %s1374_s0 = scalar_lea.vmem %s1844_s24, 16  ;;  %s1378_s1 = scalar_lea.vmem %s1844_s24, 32 }
  0x24   :  { %p1375_p11 = scmp.ne.s32.totalorder %s1844_s24, %s1374_s0  ;;  %p1379_p12 = scmp.lt.s32.totalorder %s1844_s24, %s1844_s24 }
  0x25   :  { %p1380_p13 = scmp.lt.s32.totalorder %s1378_s1, %s1374_s0 }
  0x27   :  { %p1381_p0 = por %p1380_p13, %p1379_p12 }
  0x29   :  { %p1382_p1 = pnand %p1381_p0, %p1375_p11 }
  0x2b   :  { %1385 = shalt.err (!%p1382_p1)
}
  0x2c   :  { %74 = dma.hbm_to_vmem [thread:$0]  %s2148_s3, 16, %s1844_s24, [#allocation9]  }
  0x2d   :  { %s1740_s20 = smov [#allocation11]   ;;  %s1741_s23 = smov [#allocation14]  }
  0x2e   :  { %s93_s21 = sshll.u32 %s1740_s20, 4  ;;  %s112_s25 = sshll.u32 %s1741_s23, 4  ;;  %s94_s21 = int_to_ptr.vmem [resolvable:$true] %s93_s21  ;;  %s1879_s25 = int_to_ptr.vmem [resolvable:$true] %s112_s25 }
  0x2f   :  { %s1386_s28 = scalar_lea.hbm %s2150_s5, 16 }
  0x30   :  { %p1387_p2 = scmp.ne.s32.totalorder %s2150_s5, %s1386_s28  ;;  %p1390_p3 = scmp.lt.u32.totalorder %s1386_s28, %s2150_s5 }
  0x32   :  { %p1392_p4 = pnand %p1390_p3, %p1387_p2 }
  0x34   :  { %1395 = shalt.err (!%p1392_p4)
}
  0x35   :  { %s1396_s3 = scalar_lea.vmem %s94_s21, 16  ;;  %s1400_s24 = scalar_lea.vmem %s94_s21, 32 }
  0x36   :  { %p1397_p5 = scmp.ne.s32.totalorder %s94_s21, %s1396_s3  ;;  %p1401_p6 = scmp.lt.s32.totalorder %s94_s21, %s94_s21 }
  0x37   :  { %p1402_p7 = scmp.lt.s32.totalorder %s1400_s24, %s1396_s3 }
  0x39   :  { %p1403_p8 = por %p1402_p7, %p1401_p6 }
  0x3b   :  { %p1404_p9 = pnand %p1403_p8, %p1397_p5 }
  0x3d   :  { %1407 = shalt.err (!%p1404_p9)
}
  0x3e   :  { %96 = dma.hbm_to_vmem [thread:$0]  %s2150_s5, 16, %s94_s21, [#allocation12]  }
  0x3f   :  { %s1408_s26 = scalar_lea.hbm %s2152_s7, 256 }
  0x40   :  { %p1409_p10 = scmp.ne.s32.totalorder %s2152_s7, %s1408_s26  ;;  %p1412_p11 = scmp.lt.u32.totalorder %s1408_s26, %s2152_s7 }
  0x42   :  { %p1414_p12 = pnand %p1412_p11, %p1409_p10 }
  0x44   :  { %1417 = shalt.err (!%p1414_p12)
}
  0x45   :  { %s1418_s0 = scalar_lea.vmem %s1879_s25, 256  ;;  %p1423_p0 = scmp.lt.s32.totalorder %s1879_s25, %s1879_s25 }
  0x46   :  { %p1419_p13 = scmp.ne.s32.totalorder %s1879_s25, %s1418_s0  ;;  %p1424_p1 = scmp.lt.s32.totalorder %s1418_s0, %s1418_s0 }
  0x48   :  { %p1425_p2 = por %p1424_p1, %p1423_p0 }
  0x4a   :  { %p1426_p3 = pnand %p1425_p2, %p1419_p13 }
  0x4c   :  { %1429 = shalt.err (!%p1426_p3)
}
  0x4d   :  { %118 = dma.hbm_to_vmem [thread:$0]  %s2152_s7, 256, %s1879_s25, [#allocation15], %s1738_s18, %s1738_s18, %s1739_s19  }
  0x4e   :  { %s1742_s1 = smov [#allocation17]   ;;  %s1743_s24 = smov [#allocation20]  }
  0x4f   :  { %s135_s3 = sshll.u32 %s1742_s1, 4  ;;  %s154_s22 = sshll.u32 %s1743_s24, 4  ;;  %s136_s3 = int_to_ptr.vmem [resolvable:$true] %s135_s3  ;;  %s1913_s22 = int_to_ptr.vmem [resolvable:$true] %s154_s22 }
  0x50   :  { %s1430_s23 = scalar_lea.hbm %s2154_s9, 128 }
  0x51   :  { %p1431_p4 = scmp.ne.s32.totalorder %s2154_s9, %s1430_s23  ;;  %p1434_p5 = scmp.lt.u32.totalorder %s1430_s23, %s2154_s9 }
  0x53   :  { %p1436_p6 = pnand %p1434_p5, %p1431_p4 }
  0x55   :  { %1439 = shalt.err (!%p1436_p6)
}
  0x56   :  { %s1440_s7 = scalar_lea.vmem %s136_s3, 128  ;;  %p1445_p8 = scmp.lt.s32.totalorder %s136_s3, %s136_s3 }
  0x57   :  { %p1441_p7 = scmp.ne.s32.totalorder %s136_s3, %s1440_s7  ;;  %p1446_p9 = scmp.lt.s32.totalorder %s1440_s7, %s1440_s7 }
  0x59   :  { %p1447_p10 = por %p1446_p9, %p1445_p8 }
  0x5b   :  { %p1448_p11 = pnand %p1447_p10, %p1441_p7 }
  0x5d   :  { %1451 = shalt.err (!%p1448_p11)
}
  0x5e   :  { %138 = dma.hbm_to_vmem [thread:$0]  %s2154_s9, 128, %s136_s3, [#allocation18]  }
  0x5f   :  { %s1452_s21 = scalar_lea.hbm %s2156_s11, 768 }
  0x60   :  { %p1453_p12 = scmp.ne.s32.totalorder %s2156_s11, %s1452_s21  ;;  %p1456_p13 = scmp.lt.u32.totalorder %s1452_s21, %s2156_s11 }
  0x62   :  { %p1458_p0 = pnand %p1456_p13, %p1453_p12 }
  0x64   :  { %1461 = shalt.err (!%p1458_p0)
}
  0x65   :  { %s1462_s23 = scalar_lea.vmem %s1913_s22, 768  ;;  %p1467_p2 = scmp.lt.s32.totalorder %s1913_s22, %s1913_s22 }
  0x66   :  { %p1463_p1 = scmp.ne.s32.totalorder %s1913_s22, %s1462_s23  ;;  %p1468_p3 = scmp.lt.s32.totalorder %s1462_s23, %s1462_s23 }
  0x68   :  { %p1469_p4 = por %p1468_p3, %p1467_p2 }
  0x6a   :  { %p1470_p5 = pnand %p1469_p4, %p1463_p1 }
  0x6c   :  { %1473 = shalt.err (!%p1470_p5)
}
  0x6d   :  { %160 = dma.hbm_to_vmem [thread:$0]  %s2156_s11, 768, %s1913_s22, [#allocation21], %s1738_s18, %s1738_s18, %s1739_s19  }
  0x6e   :  { %s1744_s26 = smov [#allocation23]   ;;  %s1745_s28 = smov [#allocation2]  }
  0x6f   :  { %s179_s27 = sshll.u32 %s1744_s26, 4  ;;  %s36_s29 = sshll.u32 %s1745_s28, 4  ;;  %s180_s27 = int_to_ptr.vmem [resolvable:$true] %s179_s27  ;;  %s1947_s29 = int_to_ptr.vmem [resolvable:$true] %s36_s29 }
  0x70   :  { %s1474_s30 = scalar_lea.hbm %s2158_s13, 16 }
  0x71   :  { %p1475_p6 = scmp.ne.s32.totalorder %s2158_s13, %s1474_s30  ;;  %p1478_p7 = scmp.lt.u32.totalorder %s1474_s30, %s2158_s13 }
  0x73   :  { %p1480_p8 = pnand %p1478_p7, %p1475_p6 }
  0x75   :  { %1483 = shalt.err (!%p1480_p8)
}
  0x76   :  { %s1484_s11 = scalar_lea.vmem %s180_s27, 16  ;;  %s1488_s22 = scalar_lea.vmem %s180_s27, 32 }
  0x77   :  { %p1485_p9 = scmp.ne.s32.totalorder %s180_s27, %s1484_s11  ;;  %p1489_p10 = scmp.lt.s32.totalorder %s180_s27, %s180_s27 }
  0x78   :  { %p1490_p11 = scmp.lt.s32.totalorder %s1488_s22, %s1484_s11 }
  0x7a   :  { %p1491_p12 = por %p1490_p11, %p1489_p10 }
  0x7c   :  { %p1492_p13 = pnand %p1491_p12, %p1485_p9 }
  0x7e   :  { %1495 = shalt.err (!%p1492_p13)
}
  0x7f   :  { %182 = dma.hbm_to_vmem [thread:$0]  %s2158_s13, 16, %s180_s27, [#allocation24]  }
  0x80   :  { %s2164_s9 = sld [smem:[#allocation39_spill]] }
  0x86   :  { %s1496_s3 = scalar_lea.hbm %s2164_s9, 256 }
  0x87   :  { %p1497_p0 = scmp.ne.s32.totalorder %s2164_s9, %s1496_s3  ;;  %p1500_p1 = scmp.lt.u32.totalorder %s1496_s3, %s2164_s9 }
  0x89   :  { %p1502_p2 = pnand %p1500_p1, %p1497_p0 }
  0x8b   :  { %1505 = shalt.err (!%p1502_p2)
}
  0x8c   :  { %s1506_s30 = scalar_lea.vmem %s1947_s29, 256  ;;  %p1511_p4 = scmp.lt.s32.totalorder %s1947_s29, %s1947_s29 }
  0x8d   :  { %p1507_p3 = scmp.ne.s32.totalorder %s1947_s29, %s1506_s30  ;;  %p1512_p5 = scmp.lt.s32.totalorder %s1506_s30, %s1506_s30 }
  0x8f   :  { %p1513_p6 = por %p1512_p5, %p1511_p4 }
  0x91   :  { %p1514_p7 = pnand %p1513_p6, %p1507_p3 }
  0x93   :  { %1517 = shalt.err (!%p1514_p7)
}
  0x94   :  { %42 = dma.hbm_to_vmem [thread:$0]  %s2164_s9, 256, %s1947_s29, [#allocation3], %s1738_s18, %s1738_s18, %s1739_s19  }
  0x95   :  { %s1746_s0 = smov [#allocation7]   ;;  %s1747_s21 = smov [#allocation10]  }
  0x96   :  { %s61_s5 = sshll.u32 %s1746_s0, 4  ;;  %s80_s1 = sshll.u32 %s1747_s21, 4  ;;  %s62_s5 = int_to_ptr.vmem [resolvable:$true] %s61_s5  ;;  %s1981_s1 = int_to_ptr.vmem [resolvable:$true] %s80_s1 }
  0x97   :  { %s1518_s24 = scalar_lea.hbm %s2147_s2, 128 }
  0x98   :  { %p1519_p8 = scmp.ne.s32.totalorder %s2147_s2, %s1518_s24  ;;  %p1522_p9 = scmp.lt.u32.totalorder %s1518_s24, %s2147_s2 }
  0x9a   :  { %p1524_p10 = pnand %p1522_p9, %p1519_p8 }
  0x9c   :  { %1527 = shalt.err (!%p1524_p10)
}
  0x9d   :  { %s1528_s29 = scalar_lea.vmem %s62_s5, 128  ;;  %p1533_p12 = scmp.lt.s32.totalorder %s62_s5, %s62_s5 }
  0x9e   :  { %p1529_p11 = scmp.ne.s32.totalorder %s62_s5, %s1528_s29  ;;  %p1534_p13 = scmp.lt.s32.totalorder %s1528_s29, %s1528_s29 }
  0xa0   :  { %p1535_p0 = por %p1534_p13, %p1533_p12 }
  0xa2   :  { %p1536_p1 = pnand %p1535_p0, %p1529_p11 }
  0xa4   :  { %1539 = shalt.err (!%p1536_p1)
}
  0xa5   :  { %64 = dma.hbm_to_vmem [thread:$0]  %s2147_s2, 128, %s62_s5, [#allocation6]  }
  0xa6   :  { %s1540_s25 = scalar_lea.hbm %s2149_s4, 512 }
  0xa7   :  { %p1541_p2 = scmp.ne.s32.totalorder %s2149_s4, %s1540_s25  ;;  %p1544_p3 = scmp.lt.u32.totalorder %s1540_s25, %s2149_s4 }
  0xa9   :  { %p1546_p4 = pnand %p1544_p3, %p1541_p2 }
  0xab   :  { %1549 = shalt.err (!%p1546_p4)
}
  0xac   :  { %s1550_s21 = scalar_lea.vmem %s1981_s1, 512  ;;  %p1555_p6 = scmp.lt.s32.totalorder %s1981_s1, %s1981_s1 }
  0xad   :  { %p1551_p5 = scmp.ne.s32.totalorder %s1981_s1, %s1550_s21  ;;  %p1556_p7 = scmp.lt.s32.totalorder %s1550_s21, %s1550_s21 }
  0xaf   :  { %p1557_p8 = por %p1556_p7, %p1555_p6 }
  0xb1   :  { %p1558_p9 = pnand %p1557_p8, %p1551_p5 }
  0xb3   :  { %1561 = shalt.err (!%p1558_p9)
}
  0xb4   :  { %86 = dma.hbm_to_vmem [thread:$0]  %s2149_s4, 512, %s1981_s1, [#allocation9], %s1738_s18, %s1738_s18, %s1739_s19  }
  0xb5   :  { %s1748_s11 = smov [#allocation13]   ;;  %s1749_s24 = smov [#allocation16]  }
  0xb6   :  { %s103_s22 = sshll.u32 %s1748_s11, 4  ;;  %s125_s17 = sshll.u32 %s1749_s24, 4  ;;  %s104_s22 = int_to_ptr.vmem [resolvable:$true] %s103_s22  ;;  %s126_s17 = int_to_ptr.vmem [resolvable:$true] %s125_s17 }
  0xb7   :  { %s1562_s3 = scalar_lea.hbm %s2151_s6, 128 }
  0xb8   :  { %p1563_p10 = scmp.ne.s32.totalorder %s2151_s6, %s1562_s3  ;;  %p1566_p11 = scmp.lt.u32.totalorder %s1562_s3, %s2151_s6 }
  0xba   :  { %p1568_p12 = pnand %p1566_p11, %p1563_p10 }
  0xbc   :  { %1571 = shalt.err (!%p1568_p12)
}
  0xbd   :  { %s1572_s4 = scalar_lea.vmem %s104_s22, 128  ;;  %p1577_p0 = scmp.lt.s32.totalorder %s104_s22, %s104_s22 }
  0xbe   :  { %p1573_p13 = scmp.ne.s32.totalorder %s104_s22, %s1572_s4  ;;  %p1578_p1 = scmp.lt.s32.totalorder %s1572_s4, %s1572_s4 }
  0xc0   :  { %p1579_p2 = por %p1578_p1, %p1577_p0 }
  0xc2   :  { %p1580_p3 = pnand %p1579_p2, %p1573_p13 }
  0xc4   :  { %1583 = shalt.err (!%p1580_p3)
}
  0xc5   :  { %106 = dma.hbm_to_vmem [thread:$0]  %s2151_s6, 128, %s104_s22, [#allocation12]  }
  0xc6   :  { %s1584_s13 = scalar_lea.hbm %s2153_s8, 128 }
  0xc7   :  { %p1585_p4 = scmp.ne.s32.totalorder %s2153_s8, %s1584_s13  ;;  %p1588_p5 = scmp.lt.u32.totalorder %s1584_s13, %s2153_s8 }
  0xc9   :  { %p1590_p6 = pnand %p1588_p5, %p1585_p4 }
  0xcb   :  { %1593 = shalt.err (!%p1590_p6)
}
  0xcc   :  { %s1594_s5 = scalar_lea.vmem %s126_s17, 128  ;;  %p1599_p8 = scmp.lt.s32.totalorder %s126_s17, %s126_s17 }
  0xcd   :  { %p1595_p7 = scmp.ne.s32.totalorder %s126_s17, %s1594_s5  ;;  %p1600_p9 = scmp.lt.s32.totalorder %s1594_s5, %s1594_s5 }
  0xcf   :  { %p1601_p10 = por %p1600_p9, %p1599_p8 }
  0xd1   :  { %p1602_p11 = pnand %p1601_p10, %p1595_p7 }
  0xd3   :  { %1605 = shalt.err (!%p1602_p11)
}
  0xd4   :  { %128 = dma.hbm_to_vmem [thread:$0]  %s2153_s8, 128, %s126_s17, [#allocation15]  }
  0xd5   :  { %s1750_s22 = smov [#allocation19]   ;;  %s1751_s20 = smov [#allocation22]  }
  0xd6   :  { %s145_s24 = sshll.u32 %s1750_s22, 4  ;;  %s166_s23 = sshll.u32 %s1751_s20, 4  ;;  %s146_s24 = int_to_ptr.vmem [resolvable:$true] %s145_s24  ;;  %s2039_s23 = int_to_ptr.vmem [resolvable:$true] %s166_s23 }
  0xd7   :  { %s1606_s9 = scalar_lea.hbm %s2155_s10, 128 }
  0xd8   :  { %p1607_p12 = scmp.ne.s32.totalorder %s2155_s10, %s1606_s9  ;;  %p1610_p13 = scmp.lt.u32.totalorder %s1606_s9, %s2155_s10 }
  0xda   :  { %p1612_p0 = pnand %p1610_p13, %p1607_p12 }
  0xdc   :  { %1615 = shalt.err (!%p1612_p0)
}
  0xdd   :  { %s1616_s8 = scalar_lea.vmem %s146_s24, 128  ;;  %p1621_p2 = scmp.lt.s32.totalorder %s146_s24, %s146_s24 }
  0xde   :  { %p1617_p1 = scmp.ne.s32.totalorder %s146_s24, %s1616_s8  ;;  %p1622_p3 = scmp.lt.s32.totalorder %s1616_s8, %s1616_s8 }
  0xe0   :  { %p1623_p4 = por %p1622_p3, %p1621_p2 }
  0xe2   :  { %p1624_p5 = pnand %p1623_p4, %p1617_p1 }
  0xe4   :  { %1627 = shalt.err (!%p1624_p5)
}
  0xe5   :  { %148 = dma.hbm_to_vmem [thread:$0]  %s2155_s10, 128, %s146_s24, [#allocation18]  }
  0xe6   :  { %s1628_s13 = scalar_lea.hbm %s2157_s12, 256 }
  0xe7   :  { %p1629_p6 = scmp.ne.s32.totalorder %s2157_s12, %s1628_s13  ;;  %p1632_p7 = scmp.lt.u32.totalorder %s1628_s13, %s2157_s12 }
  0xe9   :  { %p1634_p8 = pnand %p1632_p7, %p1629_p6 }
  0xeb   :  { %1637 = shalt.err (!%p1634_p8)
}
  0xec   :  { %s1638_s5 = scalar_lea.vmem %s2039_s23, 256  ;;  %p1643_p10 = scmp.lt.s32.totalorder %s2039_s23, %s2039_s23 }
  0xed   :  { %p1639_p9 = scmp.ne.s32.totalorder %s2039_s23, %s1638_s5  ;;  %p1644_p11 = scmp.lt.s32.totalorder %s1638_s5, %s1638_s5 }
  0xef   :  { %p1645_p12 = por %p1644_p11, %p1643_p10 }
  0xf1   :  { %p1646_p13 = pnand %p1645_p12, %p1639_p9 }
  0xf3   :  { %1649 = shalt.err (!%p1646_p13)
}
  0xf4   :  { %172 = dma.hbm_to_vmem [thread:$0]  %s2157_s12, 256, %s2039_s23, [#allocation21], %s1738_s18, %s1738_s18, %s1739_s19  }
  0xf5   :  { %s1752_s11 = smov [#allocation25]   ;;  %s1753_s24 = smov [#allocation26]  }
  0xf6   :  { %s188_s22 = sshll.u32 %s1752_s11, 4  ;;  %s201_s20 = sshll.u32 %s1753_s24, 4  ;;  %s189_s22 = int_to_ptr.vmem [resolvable:$true] %s188_s22  ;;  %s202_s20 = int_to_ptr.vmem [resolvable:$true] %s201_s20 }
  0xf7   :  { %s1650_s9 = scalar_lea.hbm %s2159_s14, 1024 }
  0xf8   :  { %p1651_p0 = scmp.ne.s32.totalorder %s2159_s14, %s1650_s9  ;;  %p1654_p1 = scmp.lt.u32.totalorder %s1650_s9, %s2159_s14 }
  0xfa   :  { %p1656_p2 = pnand %p1654_p1, %p1651_p0 }
  0xfc   :  { %1659 = shalt.err (!%p1656_p2)
}
  0xfd   :  { %s1660_s12 = scalar_lea.vmem %s189_s22, 1024  ;;  %p1665_p4 = scmp.lt.s32.totalorder %s189_s22, %s189_s22 }
  0xfe   :  { %p1661_p3 = scmp.ne.s32.totalorder %s189_s22, %s1660_s12  ;;  %p1666_p5 = scmp.lt.s32.totalorder %s1660_s12, %s1660_s12 }
 0x100   :  { %p1667_p6 = por %p1666_p5, %p1665_p4 }
 0x102   :  { %p1668_p7 = pnand %p1667_p6, %p1661_p3 }
 0x104   :  { %1671 = shalt.err (!%p1668_p7)
}
 0x105   :  { %194 = dma.hbm_to_vmem [thread:$0]  %s2159_s14, 1024, %s189_s22, [#allocation24], %s1738_s18, %s1738_s18, %s1739_s19  }
 0x106   :  { %s1672_s25 = scalar_lea.hbm %s2160_s15, 16 }
 0x107   :  { %p1673_p8 = scmp.ne.s32.totalorder %s2160_s15, %s1672_s25  ;;  %p1676_p9 = scmp.lt.u32.totalorder %s1672_s25, %s2160_s15 }
 0x109   :  { %p1678_p10 = pnand %p1676_p9, %p1673_p8 }
 0x10b   :  { %1681 = shalt.err (!%p1678_p10)
}
 0x10c   :  { %s1682_s21 = scalar_lea.vmem %s202_s20, 16  ;;  %s1686_s2 = scalar_lea.vmem %s202_s20, 32 }
 0x10d   :  { %p1683_p11 = scmp.ne.s32.totalorder %s202_s20, %s1682_s21  ;;  %p1687_p12 = scmp.lt.s32.totalorder %s202_s20, %s202_s20 }
 0x10e   :  { %p1688_p13 = scmp.lt.s32.totalorder %s1686_s2, %s1682_s21 }
 0x110   :  { %p1689_p0 = por %p1688_p13, %p1687_p12 }
 0x112   :  { %p1690_p1 = pnand %p1689_p0, %p1683_p11 }
 0x114   :  { %1693 = shalt.err (!%p1690_p1)
}
 0x115   :  { %204 = dma.hbm_to_vmem [thread:$0]  %s2160_s15, 16, %s202_s20, [#allocation27]  }
 0x116   :  { %1716 = dma.done.wait [#allocation3], 256  }
 0x117   :  { %1717 = vsyncadd [#allocation3], 4294967040 }
 0x118   :  { %1718 = dma.done.wait [#allocation6], 384  }
 0x119   :  { %1719 = vsyncadd [#allocation6], 4294966912 }
 0x11a   :  { %1720 = dma.done.wait [#allocation9], 528  }
 0x11b   :  { %1721 = vsyncadd [#allocation9], 4294966768 }
 0x11c   :  { %1722 = dma.done.wait [#allocation12], 144  }
 0x11d   :  { %1723 = vsyncadd [#allocation12], 4294967152 }
 0x11e   :  { %1724 = dma.done.wait [#allocation15], 384  }
 0x11f   :  { %1725 = vsyncadd [#allocation15], 4294966912 }
 0x120   :  { %1726 = dma.done.wait [#allocation18], 256  }
 0x121   :  { %1727 = vsyncadd [#allocation18], 4294967040 }
 0x122   :  { %1728 = dma.done.wait [#allocation21], 1024  }
 0x123   :  { %1729 = vsyncadd [#allocation21], 4294966272 }
 0x124   :  { %1730 = dma.done.wait [#allocation24], 1040  }
 0x125   :  { %1731 = vsyncadd [#allocation24], 4294966256 }
 0x126   :  { %1732 = dma.done.wait [#allocation27], 16  }
 0x127   :  { %1733 = vsyncadd [#allocation27], 4294967280  ;;  %vm258_vm0 = vcmask 64512   ;;  %v257_v0 = vld [vmem:[#allocation7] sm:$0xff]  ;;  %v255_v1 = vld [vmem:[#allocation5] sm:$0xff]  ;;  %vm347_vm1 = vcmask 130048  }
 0x128   :  { %v256_v2 = vld [vmem:[#allocation5 + $0x8] sm:$0xff]  ;;  %1178 = vmatprep.subr.mxu1 %v257_v0  ;;  %1180 = vmatprep.mubr.msk.f32.mxu1 %vm258_vm0, %v255_v1  ;;  %v253_v3 = vld [vmem:[#allocation2] sm:$0xff]  ;;  %v431_v4 = vld [vmem:[#allocation10] sm:$0xff]  ;;  %vm435_vm2 = vcmask 261120   ;;  %v1754_v24 = vmov 0.0|0.0   ;;  %vm1755_vm3 = vmmov 0  }
 0x129   :  { %1179 = vmatpush3.msra.mxu1 %v257_v0  ;;  %v432_v5 = vld [vmem:[#allocation10 + $0x8] sm:$0xff]  ;;  %v254_v10 = vld [vmem:[#allocation2 + $0x8] sm:$0xff]  ;;  %v433_v11 = vld [vmem:[#allocation10 + $0x10] sm:$0xff]  ;;  %v1756_v25 = vmov 0.0   ;;  %v1757_v41 = vmov 0   ;;  %vm913_vm4 = vcmask 392192  }
 0x12a   :  { %1181 = vmatmul.mubr.msk.f32.vlgmr.msra.gmra.mrb[0].mxu1 %vm258_vm0, %v256_v2  ;;  %v1272_v6 = vpack.c.bf16 %v432_v5, %v431_v4  ;;  %v434_v12 = vld [vmem:[#allocation10 + $0x18] sm:$0xff]  ;;  %v673_v26 = vld [vmem:[#allocation14] sm:$0xff]  ;;  %v1122_v29 = vld [vmem:[#allocation11] ss:$0 sm:$0xff]  ;;  %1337 = vset.pattern.permute.xlu0 %v1757_v41  ;;  %vm1011_vm5 = vcmask 523264   ;;  %s1758_s15 = smov [#allocation28]  }
 0x12b   :  { %1187 = vmatprep.mubr.msk.f32.mxu1 %vm347_vm1, %v253_v3  ;;  %v1276_v13 = vpack.c.bf16 %v434_v12, %v433_v11  ;;  %v1117_v14 = vld [vmem:[#allocation8] ss:$0 sm:$0xff]  ;;  %v674_v27 = vld [vmem:[#allocation14 + $0x8] sm:$0xff]  ;;  %v599_v35 = vld [vmem:[#allocation13] sm:$0xff]  ;;  %s1098_s19 = sshll.u32 %s1758_s15, 4  ;;  %s1099_s19 = int_to_ptr.vmem [resolvable:$true] %s1098_s19 }
 0x12c   :  { %1273 = vmatprep.subr.bf16.mxu0 %v1272_v6  ;;  %v1288_v28 = vpack.c.bf16 %v674_v27, %v673_v26  ;;  %v749_v36 = vld [vmem:[#allocation17] sm:$0xff]  ;;  %v748_v37 = vld [vmem:[#allocation16] sm:$0xff]  ;;  %v823_v38 = vld [vmem:[#allocation19] sm:$0xff]  ;;  %s1694_s5 = scalar_lea.vmem %s1099_s19, 128  ;;  %p1699_p3 = scmp.lt.s32.totalorder %s1099_s19, %s1099_s19 }
 0x12d   :  { %1275 = vmatpush3.bf16.msra.mxu0 %v1272_v6  ;;  %v831_v39 = vld [vmem:[#allocation20] sm:$0xff]  ;;  %v832_v40 = vld [vmem:[#allocation20 + $0x8] sm:$0xff]  ;;  %v833_v43 = vld [vmem:[#allocation20 + $0x10] sm:$0xff]  ;;  %826 = vperm.xlu0 %1337, %v823_v38   ;;  %p1695_p2 = scmp.ne.s32.totalorder %s1099_s19, %s1694_s5  ;;  %p1700_p4 = scmp.lt.s32.totalorder %s1694_s5, %s1694_s5 }
 0x12e   :  { %1277 = vmatprep.subr.bf16.mxu0 %v1276_v13  ;;  %v1294_v42 = vpack.c.bf16 %v832_v40, %v831_v39  ;;  %v834_v44 = vld [vmem:[#allocation20 + $0x18] sm:$0xff]  ;;  %v835_v52 = vld [vmem:[#allocation20 + $0x20] sm:$0xff]  ;;  %v836_v53 = vld [vmem:[#allocation20 + $0x28] sm:$0xff] }
 0x12f   :  { %v1297_v45 = vpack.c.bf16 %v834_v44, %v833_v43  ;;  %v838_v54 = vld [vmem:[#allocation22] sm:$0xff]  ;;  %v839_v55 = vld [vmem:[#allocation22 + $0x8] sm:$0xff]  ;;  %v1300_v56 = vpack.c.bf16 %v836_v53, %v835_v52  ;;  %v996_v59 = vld [vmem:[#allocation25] sm:$0xff]  ;;  %p1701_p5 = por %p1700_p4, %p1699_p3 }
 0x130   :  { %v1291_v58 = vpack.c.bf16 %v839_v55, %v838_v54  ;;  %v997_v60 = vld [vmem:[#allocation25 + $0x8] sm:$0xff]  ;;  %v998_v1 = vld [vmem:[#allocation25 + $0x10] sm:$0xff]  ;;  %v999_v2 = vld [vmem:[#allocation25 + $0x18] sm:$0xff] }
 0x131   :  { %1279 = vmatpush3.bf16.msra.mxu0 %v1276_v13  ;;  %v1303_v62 = vpack.c.bf16 %v997_v60, %v996_v59  ;;  %v1000_v4 = vld [vmem:[#allocation25 + $0x20] sm:$0xff]  ;;  %v1001_v5 = vld [vmem:[#allocation25 + $0x28] sm:$0xff]  ;;  %v1130_v13 = vld [vmem:[#allocation23] ss:$0 sm:$0xff]  ;;  %p1702_p6 = pnand %p1701_p5, %p1695_p2 }
 0x132   :  { %1287 = vmatprep.subr.bf16.mxu0 %v1754_v24  ;;  %v1309_v6 = vpack.c.bf16 %v1001_v5, %v1000_v4 }
 0x1ac   :  { %v827_v50 = vpop.permute.xlu0 %826 }
 0x1fd   :  { %v1182_v7 = vpop.f32.mrb[0].mxu1 }
 0x1fe   :  { %v331_v8 = vpop.f32.mrb[1].mxu1 }
 0x1ff   :  { %v1268_v9 = vpack.c.bf16 %v1182_v7, %v331_v8 }
 0x201   :  { %1269 = vmatprep.subr.bf16.mxu1 %v1268_v9 }
 0x202   :  { %1271 = vmatpush3.bf16.msra.mxu1 %v1268_v9  ;;  %v1002_v9 = vld [vmem:[#allocation25 + $0x30] sm:$0xff] }
 0x205   :  { %1188 = vmatmul.mubr.msk.f32.vlgmr.msra.gmra.mrb[2].mxu1 %vm347_vm1, %v254_v10 }
 0x206   :  { %1205 = vmatprep.mubr.msk.f32.mxu1 %vm347_vm1, %v253_v3  ;;  %v1306_v3 = vpack.c.bf16 %v999_v2, %v998_v1 }
 0x2d8   :  { %v1189_v15 = vpop.f32.mrb[2].mxu1 }
 0x2d9   :  { %v426_v16 = vadd.f32 %v1189_v15, %v1117_v14  ;;  %v420_v17 = vpop.f32.mrb[3].mxu1 }
 0x2da   :  { %v421_v18 = vadd.f32 %v1117_v14, %v420_v17 }
 0x2db   :  { %v430_v20 = vmax.f32 %v426_v16, 0.0 }
 0x2dc   :  { %v429_v19 = vmax.f32 %v421_v18, 0.0  ;;  %v1131_v18 = vld [vmem:[#allocation26] ss:$0 sm:$0xff] }
 0x2de   :  { %1198 = vmatprep.mubr.msk.f32.mxu0 %vm435_vm2, %v429_v19 }
 0x2df   :  { %1199 = vmatmul.mubr.msk.f32.vlgmr.msra.gmra.mrb[0].mxu0 %vm435_vm2, %v430_v20 }
 0x2e0   :  { %1219 = vmatprep.mubr.msk.f32.mxu0 %vm1755_vm3, %v1756_v25  ;;  %1289 = vmatpush3.bf16.msra.mxu0 %v1288_v28 }
 0x2e1   :  { %1290 = vmatprep.subr.bf16.mxu0 %v1754_v24 }
 0x3b2   :  { %v1200_v21 = vpop.f32.mrb[0].mxu0 }
 0x3b3   :  { %v508_v22 = vpop.f32.mrb[1].mxu0 }
 0x3b4   :  { %v1280_v23 = vpack.c.bf16 %v1200_v21, %v508_v22 }
 0x3b6   :  { %1281 = vmatprep.subr.bf16.mxu1 %v1280_v23 }
 0x3b7   :  { %1283 = vmatpush3.bf16.msra.mxu1 %v1280_v23 }
 0x3b8   :  { %1284 = vmatprep.subr.bf16.mxu1 %v1754_v24 }
 0x3ba   :  { %1206 = vmatmul.mubr.msk.f32.vlgmr.msra.gmra.mrb[4].mxu1 %vm347_vm1, %v254_v10  ;;  %v1003_v10 = vld [vmem:[#allocation25 + $0x38] sm:$0xff] }
 0x3bb   :  { %1212 = vmatprep.mubr.msk.f32.mxu1 %vm1755_vm3, %v1756_v25  ;;  %v1312_v11 = vpack.c.bf16 %v1003_v10, %v1002_v9 }
 0x48d   :  { %v1207_v30 = vpop.f32.mrb[4].mxu1 }
 0x48e   :  { %v596_v31 = vadd.f32 %v1207_v30, %v1122_v29  ;;  %v590_v32 = vpop.f32.mrb[5].mxu1 }
 0x48f   :  { %v591_v33 = vadd.f32 %v1122_v29, %v590_v32 }
 0x491   :  { %v1285_v34 = vpack.c.bf16 %v596_v31, %v591_v33 }
 0x493   :  { %1286 = vmatpush3.bf16.msra.mxu1 %v1285_v34 }
 0x494   :  { %1222 = vmatprep.subr.mxu1 %v1756_v25 }
 0x496   :  { %1213 = vmatmul.mubr.msk.f32.vlgmr.msra.gmra.mrb[6].mxu1 %vm347_vm1, %v599_v35 }
 0x497   :  { %1223 = vmatpush3.msra.mxu1 %v749_v36  ;;  %1224 = vmatprep.mubr.msk.f32.mxu1 %vm1755_vm3, %v1756_v25 }
 0x498   :  { %1293 = vmatprep.subr.bf16.mxu1 %v1754_v24 }
 0x49a   :  { %1225 = vmatmul.mubr.msk.f32.vlgmr.msra.gmra.mrb[8].mxu1 %vm258_vm0, %v748_v37 }
 0x49b   :  { %1246 = vmatprep.mubr.msk.f32.mxu1 %vm1755_vm3, %v1756_v25  ;;  %1295 = vmatpush3.bf16.msra.mxu1 %v1294_v42 }
 0x49c   :  { %1296 = vmatprep.subr.bf16.mxu1 %v1754_v24 }
 0x49f   :  { %1298 = vmatpush3.bf16.msra.mxu1 %v1297_v45 }
 0x4a0   :  { %1299 = vmatprep.subr.bf16.mxu1 %v1754_v24 }
 0x4a3   :  { %1301 = vmatpush3.bf16.msra.mxu1 %v1300_v56 }
 0x569   :  { %v669_v46 = vpop.f32.mrb[6].mxu1 }
 0x56a   :  { %v1214_v47 = vpop.f32.mrb[7].mxu1  ;;  %1220 = vmatmul.mubr.msk.f32.vlgmr.msra.gmra.mrb[2].mxu0 %vm347_vm1, %v669_v46 }
 0x56b   :  { %1231 = vmatprep.mubr.msk.f32.mxu0 %vm1755_vm3, %v1756_v25  ;;  %1292 = vmatpush3.bf16.msra.mxu0 %v1291_v58 }
 0x56c   :  { %1302 = vmatprep.subr.bf16.mxu0 %v1754_v24 }
 0x56d   :  { %v819_v48 = vpop.f32.mrb[8].mxu1 }
 0x56e   :  { %v1226_v49 = vpop.f32.mrb[9].mxu1  ;;  %v829_v51 = vmul.f32 %v827_v50, %v819_v48 }
 0x570   :  { %v830_v57 = vmax.f32 %v829_v51, 0.0 }
 0x572   :  { %1247 = vmatmul.mubr.msk.f32.vlgmr.msra.gmra.mrb[10].mxu1 %vm913_vm4, %v830_v57 }
 0x63d   :  { %v744_v61 = vpop.f32.mrb[2].mxu0 }
 0x63e   :  { %v837_v63 = vmax.f32 %v744_v61, 0.0  ;;  %v1221_v0 = vpop.f32.mrb[3].mxu0 }
 0x640   :  { %1232 = vmatmul.mubr.msk.f32.vlgmr.msra.gmra.mrb[4].mxu0 %vm347_vm1, %v837_v63 }
 0x641   :  { %1304 = vmatpush3.bf16.msra.mxu0 %v1303_v62  ;;  %1265 = vmatprep.mubr.msk.f32.mxu0 %vm1755_vm3, %v1756_v25 }
 0x642   :  { %1305 = vmatprep.subr.bf16.mxu0 %v1754_v24 }
 0x645   :  { %1307 = vmatpush3.bf16.msra.mxu0 %v1306_v3  ;;  %v983_v7 = vpop.f32.mrb[10].mxu1 }
 0x646   :  { %1308 = vmatprep.subr.bf16.mxu0 %v1754_v24  ;;  %v1248_v8 = vpop.f32.mrb[11].mxu1 }
 0x649   :  { %1310 = vmatpush3.bf16.msra.mxu0 %v1309_v6 }
 0x64a   :  { %1311 = vmatprep.subr.bf16.mxu0 %v1754_v24 }
 0x64d   :  { %1313 = vmatpush3.bf16.msra.mxu0 %v1312_v11 }
 0x713   :  { %v909_v12 = vpop.f32.mrb[4].mxu0 }
 0x714   :  { %v984_v14 = vadd.f32 %v983_v7, %v909_v12  ;;  %v1233_v15 = vpop.f32.mrb[5].mxu0 }
 0x716   :  { %v994_v16 = vadd.f32 %v1130_v13, %v984_v14 }
 0x718   :  { %v995_v17 = vmax.f32 %v994_v16, 0.0 }
 0x71a   :  { %1266 = vmatmul.mubr.msk.f32.vlgmr.msra.gmra.mrb[6].mxu0 %vm1011_vm5, %v995_v17 }
 0x7ed   :  { %v1081_v19 = vpop.f32.mrb[6].mxu0 }
 0x7ee   :  { %v1082_v20 = vadd.f32 %v1131_v18, %v1081_v19  ;;  %v1267_v21 = vpop.f32.mrb[7].mxu0 }
 0x7f0   :  { %v1133_v22 = vmul.f32 -1.442695, %v1082_v20 }
 0x7f2   :  { %1338 = vpow2.f32 %v1133_v22 }
 0x7fc   :  { %v1339_v23 = vpop.eup %1338 }
 0x7fd   :  { %v1088_v24 = vadd.f32 1.0, %v1339_v23 }
 0x7ff   :  { %1340 = vrcp.f32 %v1088_v24 }
 0x809   :  { %v1341_v25 = vpop.eup %1340 }
 0x80a   :  { %1091 = vst [vmem:[#allocation28] sm:$0xff] %v1341_v25 }
 0x80b   :  { %1705 = shalt.err (!%p1702_p6)
}
 0x80c   :  { %s1706_s11 = scalar_lea.hbm %s2161_s16, 128 }
 0x80d   :  { %p1707_p7 = scmp.ne.s32.totalorder %s2161_s16, %s1706_s11  ;;  %p1710_p8 = scmp.lt.u32.totalorder %s1706_s11, %s2161_s16 }
 0x80f   :  { %p1712_p9 = pnand %p1710_p8, %p1707_p7 }
 0x811   :  { %1715 = shalt.err (!%p1712_p9)
}
 0x812   :  { %1101 = dma.vmem_to_hbm [thread:$0]  %s1099_s19, 128, %s2161_s16, [#allocation4]  }
 0x813   :  { %1734 = dma.done.wait [#allocation4], 128  }
 0x814   :  { %1735 = vsyncadd [#allocation4], 4294967168 }
 0x815   :  { %1105 = vsyncpa [#allocation3], 1 }
 0x816   :  { %1106 = vsyncpa [#allocation6], 1 }
 0x817   :  { %1107 = vsyncpa [#allocation9], 1 }
 0x818   :  { %1108 = vsyncpa [#allocation12], 1 }
 0x819   :  { %1109 = vsyncpa [#allocation15], 1 }
 0x81a   :  { %1110 = vsyncpa [#allocation18], 1 }
 0x81b   :  { %1111 = vsyncpa [#allocation21], 1 }
 0x81c   :  { %1112 = vsyncpa [#allocation24], 1 }
 0x81d   :  { %1113 = vsyncpa [#allocation27], 1 }
 0x81e   :  { %1114 = vsyncpa [#allocation4], 1 }

</bundles_post_ra>
